<compile_context>
chip_gen: v6e
topology: v6e:2x2x1
jax: 0.10.0
libtpu: 0.0.40
codegen_flags: <defaults>
</compile_context>

<pallas_src>
import jax
import jax.numpy as jnp
from jax.experimental import pallas as pl
from jax.experimental.pallas import tpu as pltpu


def patch_embed_kernel(w_ref, b_ref, p_ref, o_ref):
    # w_ref: (E, K) resident weights, b_ref: (E, 1) resident bias,
    # p_ref: (1, K, TM) patch columns for this (batch, lane-tile),
    # o_ref: (1, E, TM).  One MXU push + a free VPU bias broadcast-add.
    acc = jnp.dot(w_ref[...], p_ref[0], preferred_element_type=jnp.float32)
    o_ref[0] = (acc + b_ref[...]).astype(o_ref.dtype)


def patch_embed_forward(x, weight, bias, patch_size=(4, 4)):
    """x: (B, C, H, W) f32, weight: (E, C, ph, pw) f32, bias: (E,) f32.
    Returns (B, E, ceil(H/ph), ceil(W/pw)) f32 (right/bottom zero padding,
    matching the PyTorch module's F.pad + Conv2d(stride=patch_size))."""
    ph, pw = patch_size
    B, C, H, W = x.shape
    E = weight.shape[0]

    # Pad like the PyTorch forward (zeros on the right / bottom).
    pad_h = (-H) % ph
    pad_w = (-W) % pw
    if pad_h or pad_w:
        x = jnp.pad(x, ((0, 0), (0, 0), (0, pad_h), (0, pad_w)))
    Hp, Wp = H + pad_h, W + pad_w
    Nh, Nw = Hp // ph, Wp // pw
    K = C * ph * pw
    Npb = Nh * Nw                      # patches per batch element (lane axis)

    # Single fused XLA rearrangement (im2col): (B, C, Hp, Wp) -> (B, K, Npb),
    # K-index ordering (c, u, v) matches weight.reshape(E, K).
    patches = x.reshape(B, C, Nh, ph, Nw, pw)
    patches = patches.transpose(0, 1, 3, 5, 2, 4).reshape(B, K, Npb)
    patches = patches.astype(jnp.float32)

    w2 = weight.reshape(E, K).astype(jnp.float32)      # (E, K)
    b2 = bias.reshape(E, 1).astype(jnp.float32)        # (E, 1), broadcast over lanes

    # Lane tiling: big multiple-of-128 tiles (unmasked vst) when Npb is large;
    # full-extent block (single masked tail) only for tiny problems.  TM never
    # exceeds Npb, so only standard partial *edge* blocks occur.
    if Npb < 128:
        TM = Npb
    else:
        TM = min(2048, (Npb // 128) * 128)
    grid = (B, pl.cdiv(Npb, TM))

    out = pl.pallas_call(
        patch_embed_kernel,
        out_shape=jax.ShapeDtypeStruct((B, E, Npb), jnp.float32),
        grid=grid,
        in_specs=[
            pl.BlockSpec((E, K), lambda b, i: (0, 0)),       # weights (resident)
            pl.BlockSpec((E, 1), lambda b, i: (0, 0)),       # bias    (resident)
            pl.BlockSpec((1, K, TM), lambda b, i: (b, 0, i)),  # patch columns
        ],
        out_specs=pl.BlockSpec((1, E, TM), lambda b, i: (b, 0, i)),
        compiler_params=pltpu.CompilerParams(
            dimension_semantics=("parallel", "parallel"),
            vmem_limit_bytes=32 * 1024 * 1024),
    )(w2, b2, patches)

    # Free reshape only — no output transpose.
    out = out.reshape(B, E, Nh, Nw)
    # TODO(synk): optional norm_layer ('batch' BatchNorm2d / 'instance'
    # InstanceNorm2d) is not implemented; the module default is norm=None.
    return out


def reference(x, weight, bias, patch_size=(4, 4)):
    """Pure-JAX reference matching the PyTorch PatchEmbed forward (norm=None)."""
    ph, pw = patch_size
    B, C, H, W = x.shape
    xp = jnp.pad(x, ((0, 0), (0, 0), (0, (-H) % ph), (0, (-W) % pw)))
    out = jax.lax.conv_general_dilated(
        xp, weight, window_strides=(ph, pw), padding="VALID",
        dimension_numbers=("NCHW", "OIHW", "NCHW"))
    return out + bias[None, :, None, None]


if __name__ == "__main__":
    B, C, H, W = 2, 3, 17, 17         # H, W not multiples of 4 -> exercises padding
    P = 4
    E = 96                            # module default embed_dim

    key = jax.random.PRNGKey(0)
    k1, k2, k3 = jax.random.split(key, 3)
    x = jax.random.normal(k1, (B, C, H, W), dtype=jnp.float32)

    fan_in = C * P * P
    w_std = (1.0 / fan_in) ** 0.5     # ~ PyTorch Conv2d default init scale
    weight = w_std * jax.random.normal(k2, (E, C, P, P), dtype=jnp.float32)
    bias = w_std * jax.random.normal(k3, (E,), dtype=jnp.float32)

    out = patch_embed_forward(x, weight, bias, (P, P))
    out = jax.block_until_ready(out)

    ref = reference(x, weight, bias, (P, P))
    assert out.shape == (B, E, (H + P - 1) // P, (W + P - 1) // P), out.shape
    err = float(jnp.max(jnp.abs(out - ref)))
    assert jnp.allclose(out, ref, atol=1e-4, rtol=1e-4), err
    print("KERNEL_OK")
</pallas_src>

<mosaic_0001>
module attributes {stable_mosaic.version = 11 : i64} {
  func.func @patch_embed_kernel(%arg0: i32, %arg1: i32, %arg2: memref<96x48xf32, #tpu.memory_space<vmem>>, %arg3: memref<96x1xf32, #tpu.memory_space<vmem>>, %arg4: memref<1x48x25xf32, #tpu.memory_space<vmem>>, %arg5: memref<1x96x25xf32, #tpu.memory_space<vmem>>) attributes {dimension_semantics = [#tpu.dimension_semantics<parallel>, #tpu.dimension_semantics<parallel>], iteration_bounds = array<i64: 2, 1>, scalar_prefetch = 0 : i64, scratch_operands = 0 : i64, tpu.core_type = #tpu.core_type<tc>, window_params = [{pipeline_mode = #tpu.pipeline_mode<synchronous>, transform_indices = @transform_0, window_bounds = array<i64: 96, 48>}, {pipeline_mode = #tpu.pipeline_mode<synchronous>, transform_indices = @transform_1, window_bounds = array<i64: 96, 1>}, {transform_indices = @transform_2, window_bounds = array<i64: 1, 48, 25>}, {transform_indices = @transform_3, window_bounds = array<i64: 1, 96, 25>}]} {
    %c0 = arith.constant 0 : index
    %c0_0 = arith.constant 0 : index
    %0 = vector.load %arg2[%c0, %c0_0] : memref<96x48xf32, #tpu.memory_space<vmem>>, vector<96x48xf32>
    %c0_1 = arith.constant 0 : index
    %c0_2 = arith.constant 0 : index
    %c0_3 = arith.constant 0 : index
    %1 = vector.load %arg4[%c0_1, %c0_2, %c0_3] : memref<1x48x25xf32, #tpu.memory_space<vmem>>, vector<1x48x25xf32>
    %2 = vector.shape_cast %1 : vector<1x48x25xf32> to vector<48x25xf32>
    %cst = arith.constant dense<0.000000e+00> : vector<96x25xf32>
    %3 = tpu.matmul %0, %2, %cst {dimension_numbers = #tpu.dot_dimension_numbers<[1], [0], [0], [1], [0, 0, 1, 1], [], []>} : vector<96x48xf32>, vector<48x25xf32>, vector<96x25xf32> -> vector<96x25xf32>
    %c0_4 = arith.constant 0 : index
    %c0_5 = arith.constant 0 : index
    %4 = vector.load %arg3[%c0_4, %c0_5] : memref<96x1xf32, #tpu.memory_space<vmem>>, vector<96x1xf32>
    %5 = vector.broadcast %4 : vector<96x1xf32> to vector<96x25xf32>
    %6 = arith.addf %3, %5 : vector<96x25xf32>
    %c0_6 = arith.constant 0 : index
    %c0_7 = arith.constant 0 : index
    %c0_8 = arith.constant 0 : index
    %7 = vector.load %arg5[%c0_6, %c0_7, %c0_8] : memref<1x96x25xf32, #tpu.memory_space<vmem>>, vector<1x96x25xf32>
    %8 = vector.shape_cast %7 : vector<1x96x25xf32> to vector<96x25xf32>
    %9 = vector.shape_cast %6 : vector<96x25xf32> to vector<1x96x25xf32>
    tpu.vector_store %arg5[%c0_6, %c0_7, %c0_8], %9 {strides = array<i32>} : memref<1x96x25xf32, #tpu.memory_space<vmem>>, vector<1x96x25xf32>,
    return
  }
  func.func @transform_0(%arg0: i32, %arg1: i32) -> (i32, i32) {
    %c0_i32 = arith.constant 0 : i32
    %c0_i32_0 = arith.constant 0 : i32
    %c0_i32_1 = arith.constant 0 : i32
    return %c0_i32, %c0_i32_0 : i32, i32
  }
  func.func @transform_1(%arg0: i32, %arg1: i32) -> (i32, i32) {
    %c0_i32 = arith.constant 0 : i32
    %c0_i32_0 = arith.constant 0 : i32
    %c0_i32_1 = arith.constant 0 : i32
    return %c0_i32, %c0_i32_0 : i32, i32
  }
  func.func @transform_2(%arg0: i32, %arg1: i32) -> (i32, i32, i32) {
    %c0_i32 = arith.constant 0 : i32
    %c0_i32_0 = arith.constant 0 : i32
    return %arg0, %c0_i32, %arg1 : i32, i32, i32
  }
  func.func @transform_3(%arg0: i32, %arg1: i32) -> (i32, i32, i32) {
    %c0_i32 = arith.constant 0 : i32
    %c0_i32_0 = arith.constant 0 : i32
    return %arg0, %c0_i32, %arg1 : i32, i32, i32
  }
}

</mosaic_0001>

<bundles_post_ra>
// kernel: tpu_custom_call.1
= control target key start
LH: loop header
LB: loop body
LE: loop exit
PB: predicated region body
PF: predicated region fallthrough
CT: control target
= control target key end

     0   :  { %s705_s12 = smov 0   ;;  %s707_s13 = smov 0   ;;  %s852_s0 = inlined_call_operand.vmem [shape: f32[96,48], index: 0, kind: input, shape index: {}]   ;;  %s853_s1 = inlined_call_operand.vmem [shape: f32[96,1], index: 1, kind: input, shape index: {}]   ;;  %s854_s2 = inlined_call_operand.vmem [shape: f32[2,48,25], index: 2, kind: input, shape index: {}]   ;;  %s855_s3 = inlined_call_operand.vmem [shape: f32[2,96,25], index: 3, kind: output, shape index: {}]  }
   0x1   :  { %s709_s14 = smov 0  }
   0x2 LB: > { %s25_s15 = sadd.s32 1, %s678_s13  ;;  %p554_p0 = scmp.ge.s32.totalorder %s682_s14, 1  ;;  %s682_s14 = sphi %s709_s14, %s13_s14   ;;  %s678_s13 = sphi %s707_s13, %s857_s13   ;;  %s674_s12 = sphi %s705_s12, %s856_s12  }
   0x3   : > { %p27_p1 = scmp.ge.s32.totalorder %s25_s15, 2  ;;  %p156_p2 = scmp.lt.s32.totalorder %s682_s14, 3 }
   0x5   : > { %s859_s15 = smov (%p27_p1, %s25_s15), 0  ;;  %p157_p3 = pnand %p554_p0, %p156_p2 }
   0x6   : > { %p186_p4 = scmp.lt.s32.totalorder (!%p157_p3), %s674_s12, 1 }
   0x7   : > { %160 = sbr.rel (%p157_p3) target bundleno = 235 (0xeb), region = 32 }
   0xc   : > { %v202_v0 = vld [vmem:[%s852_s0] sm:$0xff]  ;;  %vm292_vm0 = vcmask 392192   ;;  %v208_v1 = vld [vmem:[%s852_s0 + $0x30] sm:$0xff]  ;;  %s861_s12 = smov (!%p186_p4, %s674_s12), 1  ;;  %v684_v2 = vmov 0   ;;  %v203_v11 = vld [vmem:[%s852_s0 + $0x8] sm:$0xff] }
   0xd   : > { %601 = vmatprep.mubr.msk.f32.mxu0 %vm292_vm0, %v202_v0  ;;  %610 = vmatprep.mubr.msk.f32.mxu1 %vm292_vm0, %v208_v1  ;;  %s631_s20 = smul.u32 48, %s861_s12  ;;  %v222_v3 = vld [vmem:[%s853_s1 + $0x10] sm:$0xff]  ;;  %v220_v4 = vld [vmem:[%s853_s1] sm:$0xff]  ;;  %v209_v12 = vld [vmem:[%s852_s0 + $0x38] sm:$0xff]  ;;  %vm454_vm1 = vcmask 203776  }
   0xe   : > { %659 = vset.pattern.permute.xlu1 %v684_v2  ;;  %658 = vset.pattern.permute.xlu0 %v684_v2  ;;  %v204_v13 = vld [vmem:[%s852_s0 + $0x10] sm:$0xff]  ;;  %v210_v14 = vld [vmem:[%s852_s0 + $0x40] sm:$0xff]  ;;  %v223_v15 = vld [vmem:[%s853_s1 + $0x18] sm:$0xff]  ;;  %s632_s22 = smul.u32 96, %s861_s12 }
   0xf   : > { %244 = vperm.xlu1 %659, %v222_v3   ;;  %234 = vperm.xlu0 %658, %v220_v4   ;;  %s193_s27 = scalar_lea.vmem %s854_s2, %s631_s20  ;;  %v221_v16 = vld [vmem:[%s853_s1 + $0x8] sm:$0xff]  ;;  %v205_v17 = vld [vmem:[%s852_s0 + $0x18] sm:$0xff]  ;;  %v206_v19 = vld [vmem:[%s852_s0 + $0x20] sm:$0xff] }
  0x10   : > { %v219_v5 = vld [vmem:[%s193_s27 + $0x28] sm:$0xff]  ;;  %v218_v6 = vld [vmem:[%s193_s27 + $0x20] sm:$0xff]  ;;  %v217_v7 = vld [vmem:[%s193_s27 + $0x18] sm:$0xff]  ;;  %s817_s25 = scalar_lea.vmem %s855_s3, %s632_s22 }
  0x11   : > { %589 = vmatprep.subr.mxu0 %v219_v5  ;;  %619 = vmatprep.subr.mxu1 %v219_v5  ;;  %v216_v8 = vld [vmem:[%s193_s27 + $0x10] sm:$0xff]  ;;  %v215_v9 = vld [vmem:[%s193_s27 + $0x8] sm:$0xff]  ;;  %v214_v10 = vld [vmem:[%s193_s27] sm:$0xff] }
  0x12   : > { %590 = vmatpush3.msra.mxu0 %v219_v5  ;;  %625 = vmatpush3.msra.mxu1 %v219_v5  ;;  %v211_v18 = vld [vmem:[%s852_s0 + $0x48] sm:$0xff]  ;;  %v212_v20 = vld [vmem:[%s852_s0 + $0x50] sm:$0xff]  ;;  %v224_v22 = vld [vmem:[%s853_s1 + $0x20] sm:$0xff] }
  0x13   : > { %591 = vmatprep.subr.mxu0 %v218_v6  ;;  %620 = vmatprep.subr.mxu1 %v218_v6  ;;  %v225_v21 = vld [vmem:[%s853_s1 + $0x28] sm:$0xff]  ;;  %v213_v24 = vld [vmem:[%s852_s0 + $0x58] sm:$0xff]  ;;  %v226_v26 = vld [vmem:[%s853_s1 + $0x30] sm:$0xff] }
  0x14   : > { %592 = vmatpush3.msra.mxu0 %v218_v6  ;;  %626 = vmatpush3.msra.mxu1 %v218_v6  ;;  %v207_v23 = vld [vmem:[%s852_s0 + $0x28] sm:$0xff]  ;;  %v227_v25 = vld [vmem:[%s853_s1 + $0x38] sm:$0xff]  ;;  %v228_v28 = vld [vmem:[%s853_s1 + $0x40] sm:$0xff] }
  0x15   : > { %593 = vmatprep.subr.mxu0 %v217_v7  ;;  %621 = vmatprep.subr.mxu1 %v217_v7  ;;  %v229_v27 = vld [vmem:[%s853_s1 + $0x48] sm:$0xff]  ;;  %v231_v29 = vld [vmem:[%s853_s1 + $0x58] sm:$0xff]  ;;  %v230_v30 = vld [vmem:[%s853_s1 + $0x50] sm:$0xff] }
  0x16   : > { %594 = vmatpush3.msra.mxu0 %v217_v7  ;;  %627 = vmatpush3.msra.mxu1 %v217_v7 }
  0x17   : > { %595 = vmatprep.subr.mxu0 %v216_v8  ;;  %622 = vmatprep.subr.mxu1 %v216_v8 }
  0x18   : > { %596 = vmatpush3.msra.mxu0 %v216_v8  ;;  %628 = vmatpush3.msra.mxu1 %v216_v8 }
  0x19   : > { %597 = vmatprep.subr.mxu0 %v215_v9  ;;  %623 = vmatprep.subr.mxu1 %v215_v9 }
  0x1a   : > { %598 = vmatpush3.msra.mxu0 %v215_v9  ;;  %629 = vmatpush3.msra.mxu1 %v215_v9 }
  0x1b   : > { %599 = vmatprep.subr.mxu0 %v214_v10  ;;  %624 = vmatprep.subr.mxu1 %v214_v10 }
  0x1c   : > { %600 = vmatpush3.msra.mxu0 %v214_v10  ;;  %630 = vmatpush3.msra.mxu1 %v214_v10 }
  0x1d   : > { %602 = vmatmul.mubr.msk.f32.vlgmr.msra.gmra.mxu0 %vm292_vm0, %v203_v11  ;;  %611 = vmatmul.mubr.msk.f32.vlgmr.msra.gmra.mxu1 %vm292_vm0, %v209_v12 }
  0x1e   : > { %604 = vmatprep.mubr.msk.f32.mxu0 %vm292_vm0, %v204_v13  ;;  %613 = vmatprep.mubr.msk.f32.mxu1 %vm292_vm0, %v210_v14 }
  0x1f   : > { %249 = vperm.xlu1 %659, %v223_v15   ;;  %239 = vperm.xlu0 %658, %v221_v16  }
  0x21   : > { %605 = vmatmul.mubr.msk.f32.gmra.mxu0 %vm292_vm0, %v205_v17  ;;  %614 = vmatmul.mubr.msk.f32.gmra.mxu1 %vm292_vm0, %v211_v18 }
  0x22   : > { %607 = vmatprep.mubr.msk.f32.mxu0 %vm292_vm0, %v206_v19  ;;  %616 = vmatprep.mubr.msk.f32.mxu1 %vm292_vm0, %v212_v20 }
  0x23   : > { %259 = vperm.xlu1 %659, %v225_v21   ;;  %254 = vperm.xlu0 %658, %v224_v22  }
  0x25   : > { %608 = vmatmul.mubr.msk.f32.gmra.mxu0 %vm292_vm0, %v207_v23  ;;  %617 = vmatmul.mubr.msk.f32.gmra.mxu1 %vm292_vm0, %v213_v24 }
  0x27   : > { %269 = vperm.xlu1 %659, %v227_v25   ;;  %264 = vperm.xlu0 %658, %v226_v26  }
  0x2b   : > { %279 = vperm.xlu1 %659, %v229_v27   ;;  %274 = vperm.xlu0 %658, %v228_v28  }
  0x2f   : > { %289 = vperm.xlu1 %659, %v231_v29   ;;  %284 = vperm.xlu0 %658, %v230_v30  }
  0x8a   : > { %v245_v31 = vpop.permute.xlu1 %244  ;;  %v235_v32 = vpop.permute.xlu0 %234 }
  0x9a   : > { %v250_v33 = vpop.permute.xlu1 %249  ;;  %v240_v34 = vpop.permute.xlu0 %239 }
  0x9e   : > { %v260_v35 = vpop.permute.xlu1 %259  ;;  %v255_v36 = vpop.permute.xlu0 %254 }
  0xa2   : > { %v270_v37 = vpop.permute.xlu1 %269  ;;  %v265_v38 = vpop.permute.xlu0 %264 }
  0xa6   : > { %v280_v41 = vpop.permute.xlu1 %279  ;;  %v275_v46 = vpop.permute.xlu0 %274 }
  0xaa   : > { %v290_v55 = vpop.permute.xlu1 %289  ;;  %v285_v60 = vpop.permute.xlu0 %284 }
  0xdd   : > { %v603_v39 = vpop.f32.mrf.mxu0  ;;  %v612_v40 = vpop.f32.mrf.mxu1 }
  0xde   : > { %v401_v42 = vadd.f32 %v603_v39, %v240_v34  ;;  %v431_v43 = vadd.f32 %v612_v40, %v270_v37 }
  0xdf   : > { %v395_v44 = vpop.f32.mrf.mxu0  ;;  %v425_v45 = vpop.f32.mrf.mxu1 }
  0xe0   : > { %456 = vst.msk [vmem:[%s817_s25 + $0x8] sm:$0xff] %vm454_vm1, %v401_v42  ;;  %462 = vst.msk [vmem:[%s817_s25 + $0x38] sm:$0xff] %vm454_vm1, %v431_v43  ;;  %v396_v47 = vadd.f32 %v395_v44, %v235_v32  ;;  %v426_v48 = vadd.f32 %v425_v45, %v265_v38 }
  0xe1   : > { %v606_v49 = vpop.f32.mrf.mxu0  ;;  %v615_v50 = vpop.f32.mrf.mxu1 }
  0xe2   : > { %455 = vst.msk [vmem:[%s817_s25] sm:$0xff] %vm454_vm1, %v396_v47  ;;  %461 = vst.msk [vmem:[%s817_s25 + $0x30] sm:$0xff] %vm454_vm1, %v426_v48  ;;  %v411_v51 = vadd.f32 %v606_v49, %v250_v33  ;;  %v441_v52 = vadd.f32 %v615_v50, %v280_v41 }
  0xe3   : > { %v405_v53 = vpop.f32.mrf.mxu0  ;;  %v435_v54 = vpop.f32.mrf.mxu1 }
  0xe4   : > { %458 = vst.msk [vmem:[%s817_s25 + $0x18] sm:$0xff] %vm454_vm1, %v411_v51  ;;  %464 = vst.msk [vmem:[%s817_s25 + $0x48] sm:$0xff] %vm454_vm1, %v441_v52  ;;  %v406_v56 = vadd.f32 %v405_v53, %v245_v31  ;;  %v436_v57 = vadd.f32 %v435_v54, %v275_v46 }
  0xe5   : > { %v609_v58 = vpop.f32.mrf.mxu0  ;;  %v618_v59 = vpop.f32.mrf.mxu1 }
  0xe6   : > { %457 = vst.msk [vmem:[%s817_s25 + $0x10] sm:$0xff] %vm454_vm1, %v406_v56  ;;  %463 = vst.msk [vmem:[%s817_s25 + $0x40] sm:$0xff] %vm454_vm1, %v436_v57  ;;  %v421_v61 = vadd.f32 %v609_v58, %v260_v35  ;;  %v451_v62 = vadd.f32 %v618_v59, %v290_v55 }
  0xe7   : > { %v415_v63 = vpop.f32.mrf.mxu0  ;;  %v445_v0 = vpop.f32.mrf.mxu1 }
  0xe8   : > { %460 = vst.msk [vmem:[%s817_s25 + $0x28] sm:$0xff] %vm454_vm1, %v421_v61  ;;  %466 = vst.msk [vmem:[%s817_s25 + $0x58] sm:$0xff] %vm454_vm1, %v451_v62  ;;  %v416_v1 = vadd.f32 %v415_v63, %v255_v36  ;;  %v446_v2 = vadd.f32 %v445_v0, %v285_v60 }
  0xea   : > { %459 = vst.msk [vmem:[%s817_s25 + $0x20] sm:$0xff] %vm454_vm1, %v416_v1  ;;  %465 = vst.msk [vmem:[%s817_s25 + $0x50] sm:$0xff] %vm454_vm1, %v446_v2 }
  0xeb PF: > { %s13_s14 = sadd.s32 1, %s682_s14   ;;  %s856_s12 = smov %s678_s13 }
  0xec   : > { %p10_p5 = scmp.ge.s32.totalorder %s13_s14, 4   ;;  %s857_s13 = smov %s859_s15 }
  0xee   :  { %12 = sbr.rel (!%p10_p5) target bundleno = 2 (0x2), region = 62 }

</bundles_post_ra>
